<compile_context>
chip_gen: v6e
topology: v6e:2x2x1
jax: 0.10.0
libtpu: 0.0.40
codegen_flags: <defaults>
</compile_context>

<pallas_src>
import jax
import jax.numpy as jnp
from jax import lax
from jax.experimental import pallas as pl
from jax.experimental.pallas import tpu as pltpu


def _pick_batch_tile(n, max_tile=8):
    """Largest divisor of n that is <= max_tile while keeping >=2 grid steps."""
    best = 1
    for t in range(1, min(n, max_tile) + 1):
        if n % t == 0 and (n // t) >= 2:
            best = t
    return best


def _make_kernel(L, Cin, Cout, d1, d2, stride, has_downsample, b_tile, compute_dtype):
    R = b_tile * L
    L1 = (L - 1) // stride + 1          # Conv1d: pad=d, dil=d, k=3  ->  floor((L-1)/s)+1
    R1 = b_tile * L1

    def shifted(v, off):
        # s[r] = v[r + off] if (r % Lv) + off stays inside the same sample, else 0.
        # Implemented with a static slice + zero fill (cheap relayout), plus a per-sample
        # boundary mask when several samples are packed into one block.
        Rv, C = v.shape
        Lv = Rv // b_tile
        if off == 0:
            return v
        zeros = jnp.zeros((abs(off), C), v.dtype)
        if off > 0:
            s = jnp.concatenate([v[off:, :], zeros], axis=0)
        else:
            s = jnp.concatenate([zeros, v[:Rv + off, :]], axis=0)
        if b_tile > 1:
            i = lax.broadcasted_iota(jnp.int32, (Rv, 1), 0) % Lv
            ok = jnp.logical_and(i + off >= 0, i + off < Lv)
            s = jnp.where(ok, s, jnp.zeros_like(s))
        return s

    def taps(v, d):
        # (rows, C) -> (rows, 3*C): [x[i-d], x[i], x[i+d]] concatenated along lanes.
        return jnp.concatenate([shifted(v, -d), v, shifted(v, d)], axis=1)

    def body(x_ref, w1_ref, w2_ref, s1_ref, b1_ref, s2_ref, b2_ref,
             wd_ref, sd_ref, bd_ref, o_ref, tmp_ref):
        x = x_ref[...]                                              # (R, Cin) compute_dtype

        # ---- conv1: one fused matmul with K = 3*Cin (full resolution) -----------------
        full = jnp.dot(taps(x, d1), w1_ref[...],
                       preferred_element_type=jnp.float32)          # (R, Cout) f32

        if stride > 1:
            tmp_ref[...] = full
            out1 = tmp_ref[pl.ds(0, R1, stride=stride), :]           # strided subsample
        else:
            out1 = full                                              # (R1, Cout)

        # ---- bn1 (folded, eval mode) + relu -------------------------------------------
        h = jnp.maximum(out1 * s1_ref[...] + b1_ref[...], 0.0)       # f32

        # ---- residual path -------------------------------------------------------------
        if has_downsample:
            res_full = jnp.dot(x, wd_ref[...],
                               preferred_element_type=jnp.float32)   # (R, Cout) f32
            if stride > 1:
                # `out1` has already been read from tmp_ref above, so it is safe to reuse
                # the scratch buffer for the residual subsample.
                tmp_ref[...] = res_full
                res = tmp_ref[pl.ds(0, R1, stride=stride), :]
            else:
                res = res_full
            res = res * sd_ref[...] + bd_ref[...]
        else:
            res = x.astype(jnp.float32)                              # identity residual

        # ---- conv2: one fused matmul with K = 3*Cout -----------------------------------
        out2 = jnp.dot(taps(h.astype(compute_dtype), d2), w2_ref[...],
                       preferred_element_type=jnp.float32)           # (R1, Cout)
        out2 = out2 * s2_ref[...] + b2_ref[...]

        # ---- add + relu ----------------------------------------------------------------
        o_ref[...] = jnp.maximum(out2 + res, 0.0).astype(o_ref.dtype)

    # Specialize the signature: only ship the operands / scratch this config needs.
    if has_downsample and stride > 1:
        def kernel(x, w1, w2, s1, b1, s2, b2, wd, sd, bd, o, tmp):
            body(x, w1, w2, s1, b1, s2, b2, wd, sd, bd, o, tmp)
    elif has_downsample:
        def kernel(x, w1, w2, s1, b1, s2, b2, wd, sd, bd, o):
            body(x, w1, w2, s1, b1, s2, b2, wd, sd, bd, o, None)
    elif stride > 1:
        def kernel(x, w1, w2, s1, b1, s2, b2, o, tmp):
            body(x, w1, w2, s1, b1, s2, b2, None, None, None, o, tmp)
    else:
        def kernel(x, w1, w2, s1, b1, s2, b2, o):
            body(x, w1, w2, s1, b1, s2, b2, None, None, None, o, None)

    return kernel, L1


def dilated_basic_block_1d_nlc(x_nlc, params, *, dilations, layer, block,
                               eps=1e-5, compute_dtype=jnp.bfloat16, batch_tile=None):
    """Channels-last entry point: x_nlc (N, L, Cin) -> (N, L1, Cout)."""
    stride = 1 if (layer == 2 or block != 1) else 2
    has_downsample = (layer > 2 and block == 1)

    N, L, Cin = x_nlc.shape
    Cout = params["w1"].shape[0]
    d1, d2 = dilations

    assert stride == 1 or L % stride == 0, "L must be divisible by the stride"
    if not has_downsample:
        assert Cin == Cout and stride == 1, \
            "identity residual requires Cin == Cout and stride == 1"

    b_tile = batch_tile if batch_tile is not None else _pick_batch_tile(N)
    assert N % b_tile == 0

    def fold_bn(bn):
        gamma, beta, mean, var = bn
        scale = (gamma / jnp.sqrt(var + eps)).astype(jnp.float32)
        bias = (beta - mean * scale).astype(jnp.float32)
        return scale.reshape(1, Cout), bias.reshape(1, Cout)

    s1, b1 = fold_bn(params["bn1"])
    s2, b2 = fold_bn(params["bn2"])

    # Weights reshaped so each conv is a single (rows, 3*C) @ (3*C, Cout) matmul.
    w1 = jnp.transpose(params["w1"], (2, 1, 0)).reshape(3 * Cin, Cout).astype(compute_dtype)
    w2 = jnp.transpose(params["w2"], (2, 1, 0)).reshape(3 * Cout, Cout).astype(compute_dtype)

    x_flat = x_nlc.reshape(N * L, Cin).astype(compute_dtype)

    kernel, L1 = _make_kernel(L, Cin, Cout, d1, d2, stride, has_downsample,
                              b_tile, compute_dtype)

    vec_spec = pl.BlockSpec((1, Cout), lambda i: (0, 0))
    in_specs = [
        pl.BlockSpec((b_tile * L, Cin), lambda i: (i, 0)),     # x (batch-tiled)
        pl.BlockSpec((3 * Cin, Cout), lambda i: (0, 0)),       # w1
        pl.BlockSpec((3 * Cout, Cout), lambda i: (0, 0)),      # w2
        vec_spec, vec_spec, vec_spec, vec_spec,                # bn1/bn2 scale & bias
    ]
    inputs = [x_flat, w1, w2, s1, b1, s2, b2]

    if has_downsample:
        sd, bd = fold_bn(params["bnd"])
        wd = jnp.transpose(params["wd"][:, :, 0], (1, 0)).astype(compute_dtype)
        in_specs += [pl.BlockSpec((Cin, Cout), lambda i: (0, 0)), vec_spec, vec_spec]
        inputs += [wd, sd, bd]

    scratch = [pltpu.VMEM((b_tile * L, Cout), jnp.float32)] if stride > 1 else []

    out_flat = pl.pallas_call(
        kernel,
        out_shape=jax.ShapeDtypeStruct((N * L1, Cout), jnp.float32),
        grid_spec=pltpu.PrefetchScalarGridSpec(
            num_scalar_prefetch=0,
            grid=(N // b_tile,),
            in_specs=in_specs,
            out_specs=pl.BlockSpec((b_tile * L1, Cout), lambda i: (i, 0)),
            scratch_shapes=scratch,
        ),
        compiler_params=pltpu.CompilerParams(dimension_semantics=("parallel",)),
    )(*inputs)

    return out_flat.reshape(N, L1, Cout)


def dilated_basic_block_1d(x_ncl, params, *, dilations, layer, block,
                           eps=1e-5, compute_dtype=jnp.bfloat16, batch_tile=None):
    """PyTorch-layout wrapper: x (N, Cin, L) -> (N, Cout, L1).

    In a full model, keep activations channels-last and call
    `dilated_basic_block_1d_nlc` for every block so the transposes happen only once.
    """
    x_nlc = jnp.transpose(x_ncl, (0, 2, 1)).astype(jnp.float32)
    y_nlc = dilated_basic_block_1d_nlc(x_nlc, params, dilations=dilations, layer=layer,
                                       block=block, eps=eps, compute_dtype=compute_dtype,
                                       batch_tile=batch_tile)
    return jnp.transpose(y_nlc, (0, 2, 1))


def reference(x, params, *, dilations, layer, block, eps=1e-5):
    """Pure-JAX re-implementation of the PyTorch forward (eval-mode BN)."""
    stride = 1 if (layer == 2 or block != 1) else 2
    has_downsample = (layer > 2 and block == 1)

    def conv1d(x, w, stride, dilation, padding):
        return lax.conv_general_dilated(
            x, w, window_strides=(stride,), padding=[(padding, padding)],
            rhs_dilation=(dilation,), dimension_numbers=("NCH", "OIH", "NCH"))

    def bn(x, p):
        g, b, m, v = p
        inv = g / jnp.sqrt(v + eps)
        return (x - m[None, :, None]) * inv[None, :, None] + b[None, :, None]

    out = conv1d(x, params["w1"], stride, dilations[0], dilations[0])
    out = jax.nn.relu(bn(out, params["bn1"]))
    out = conv1d(out, params["w2"], 1, dilations[1], dilations[1])
    out = bn(out, params["bn2"])
    if has_downsample:
        res = bn(conv1d(x, params["wd"], stride, 1, 0), params["bnd"])
    else:
        res = x
    return jax.nn.relu(out + res)


def _bn_params(k, c):
    k1, k2, k3, k4 = jax.random.split(k, 4)
    gamma = 1.0 + 0.1 * jax.random.normal(k1, (c,), jnp.float32)
    beta = 0.1 * jax.random.normal(k2, (c,), jnp.float32)
    mean = 0.1 * jax.random.normal(k3, (c,), jnp.float32)
    var = 0.5 + jax.random.uniform(k4, (c,), jnp.float32)
    return (gamma, beta, mean, var)


if __name__ == "__main__":
    key = jax.random.PRNGKey(0)
    ks = jax.random.split(key, 16)

    # ---- config A: layer=3, block=1 -> stride=2 + 1x1-conv downsample branch ----------
    N, Cin, Cout, L = 2, 4, 8, 16
    layer, block, dilations = 3, 1, (1, 2)
    params_a = {
        "w1": 0.2 * jax.random.normal(ks[0], (Cout, Cin, 3), jnp.float32),
        "bn1": _bn_params(ks[1], Cout),
        "w2": 0.2 * jax.random.normal(ks[2], (Cout, Cout, 3), jnp.float32),
        "bn2": _bn_params(ks[3], Cout),
        "wd": 0.2 * jax.random.normal(ks[4], (Cout, Cin, 1), jnp.float32),
        "bnd": _bn_params(ks[5], Cout),
    }
    x_a = jax.random.normal(ks[6], (N, Cin, L), jnp.float32)
    ref_a = jax.block_until_ready(
        reference(x_a, params_a, dilations=dilations, layer=layer, block=block))

    # exact-math check (f32 operands on the MXU)
    out_f32 = jax.block_until_ready(
        dilated_basic_block_1d(x_a, params_a, dilations=dilations, layer=layer,
                               block=block, compute_dtype=jnp.float32))
    assert out_f32.shape == ref_a.shape, (out_f32.shape, ref_a.shape)
    err = float(jnp.max(jnp.abs(out_f32 - ref_a)))
    assert err < 1e-4, f"f32 max abs error {err}"

    # bf16 fast path (f32 accumulation) -- loose tolerance for bf16 operand rounding
    out_bf16 = jax.block_until_ready(
        dilated_basic_block_1d(x_a, params_a, dilations=dilations, layer=layer,
                               block=block, compute_dtype=jnp.bfloat16))
    err_bf16 = float(jnp.max(jnp.abs(out_bf16 - ref_a)))
    assert err_bf16 < 1e-1, f"bf16 max abs error {err_bf16}"

    # ---- config B: layer=2, block=1 -> stride=1, identity residual (Cin == Cout) ------
    C2, L2 = 8, 16
    params_b = {
        "w1": 0.2 * jax.random.normal(ks[7], (C2, C2, 3), jnp.float32),
        "bn1": _bn_params(ks[8], C2),
        "w2": 0.2 * jax.random.normal(ks[9], (C2, C2, 3), jnp.float32),
        "bn2": _bn_params(ks[10], C2),
    }
    x_b = jax.random.normal(ks[11], (N, C2, L2), jnp.float32)
    ref_b = jax.block_until_ready(
        reference(x_b, params_b, dilations=(2, 4), layer=2, block=1))
    out_b = jax.block_until_ready(
        dilated_basic_block_1d(x_b, params_b, dilations=(2, 4), layer=2, block=1,
                               compute_dtype=jnp.float32))
    assert out_b.shape == ref_b.shape, (out_b.shape, ref_b.shape)
    err_b = float(jnp.max(jnp.abs(out_b - ref_b)))
    assert err_b < 1e-4, f"identity-residual max abs error {err_b}"

    print("KERNEL_OK")
</pallas_src>

<mosaic_0001>
module attributes {stable_mosaic.version = 11 : i64} {
  func.func @kernel(%arg0: i32, %arg1: memref<16x4xf32, #tpu.memory_space<vmem>>, %arg2: memref<12x8xf32, #tpu.memory_space<vmem>>, %arg3: memref<24x8xf32, #tpu.memory_space<vmem>>, %arg4: memref<1x8xf32, #tpu.memory_space<vmem>>, %arg5: memref<1x8xf32, #tpu.memory_space<vmem>>, %arg6: memref<1x8xf32, #tpu.memory_space<vmem>>, %arg7: memref<1x8xf32, #tpu.memory_space<vmem>>, %arg8: memref<4x8xf32, #tpu.memory_space<vmem>>, %arg9: memref<1x8xf32, #tpu.memory_space<vmem>>, %arg10: memref<1x8xf32, #tpu.memory_space<vmem>>, %arg11: memref<8x8xf32, #tpu.memory_space<vmem>>, %arg12: memref<16x8xf32, #tpu.memory_space<vmem>>) attributes {dimension_semantics = [#tpu.dimension_semantics<parallel>], iteration_bounds = array<i64: 2>, scalar_prefetch = 0 : i64, scratch_operands = 1 : i64, tpu.core_type = #tpu.core_type<tc>, window_params = [{transform_indices = @transform_0, window_bounds = array<i64: 16, 4>}, {pipeline_mode = #tpu.pipeline_mode<synchronous>, transform_indices = @transform_1, window_bounds = array<i64: 12, 8>}, {pipeline_mode = #tpu.pipeline_mode<synchronous>, transform_indices = @transform_2, window_bounds = array<i64: 24, 8>}, {pipeline_mode = #tpu.pipeline_mode<synchronous>, transform_indices = @transform_3, window_bounds = array<i64: 1, 8>}, {pipeline_mode = #tpu.pipeline_mode<synchronous>, transform_indices = @transform_4, window_bounds = array<i64: 1, 8>}, {pipeline_mode = #tpu.pipeline_mode<synchronous>, transform_indices = @transform_5, window_bounds = array<i64: 1, 8>}, {pipeline_mode = #tpu.pipeline_mode<synchronous>, transform_indices = @transform_6, window_bounds = array<i64: 1, 8>}, {pipeline_mode = #tpu.pipeline_mode<synchronous>, transform_indices = @transform_7, window_bounds = array<i64: 4, 8>}, {pipeline_mode = #tpu.pipeline_mode<synchronous>, transform_indices = @transform_8, window_bounds = array<i64: 1, 8>}, {pipeline_mode = #tpu.pipeline_mode<synchronous>, transform_indices = @transform_9, window_bounds = array<i64: 1, 8>}, {transform_indices = @transform_10, window_bounds = array<i64: 8, 8>}]} {
    %c0 = arith.constant 0 : index
    %c0_0 = arith.constant 0 : index
    %0 = vector.load %arg1[%c0, %c0_0] : memref<16x4xf32, #tpu.memory_space<vmem>>, vector<16x4xf32>
    %cst = arith.constant 0.000000e+00 : f32
    %1 = vector.broadcast %cst : f32 to vector<1x4xf32>
    %2 = vector.extract_strided_slice %0 {offsets = [0, 0], sizes = [15, 4], strides = [1, 1]} : vector<16x4xf32> to vector<15x4xf32>
    %3 = tpu.concatenate %1, %2 in 0 : vector<1x4xf32>, vector<15x4xf32> -> vector<16x4xf32>
    %cst_1 = arith.constant 0.000000e+00 : f32
    %4 = vector.broadcast %cst_1 : f32 to vector<1x4xf32>
    %5 = vector.extract_strided_slice %0 {offsets = [1, 0], sizes = [15, 4], strides = [1, 1]} : vector<16x4xf32> to vector<15x4xf32>
    %6 = tpu.concatenate %5, %4 in 0 : vector<15x4xf32>, vector<1x4xf32> -> vector<16x4xf32>
    %7 = tpu.concatenate %3, %0, %6 in 1 : vector<16x4xf32>, vector<16x4xf32>, vector<16x4xf32> -> vector<16x12xf32>
    %c0_2 = arith.constant 0 : index
    %c0_3 = arith.constant 0 : index
    %8 = vector.load %arg2[%c0_2, %c0_3] : memref<12x8xf32, #tpu.memory_space<vmem>>, vector<12x8xf32>
    %cst_4 = arith.constant dense<0.000000e+00> : vector<16x8xf32>
    %9 = tpu.matmul %7, %8, %cst_4 {dimension_numbers = #tpu.dot_dimension_numbers<[1], [0], [0], [1], [0, 0, 1, 1], [], []>} : vector<16x12xf32>, vector<12x8xf32>, vector<16x8xf32> -> vector<16x8xf32>
    %c0_5 = arith.constant 0 : index
    %c0_6 = arith.constant 0 : index
    %10 = vector.load %arg12[%c0_5, %c0_6] : memref<16x8xf32, #tpu.memory_space<vmem>>, vector<16x8xf32>
    tpu.vector_store %arg12[%c0_5, %c0_6], %9 {strides = array<i32>} : memref<16x8xf32, #tpu.memory_space<vmem>>, vector<16x8xf32>,
    %c0_7 = arith.constant 0 : index
    %c0_8 = arith.constant 0 : index
    %11 = tpu.strided_load %arg12[%c0_7, %c0_8] {strides = array<i32: 2, 1>} : memref<16x8xf32, #tpu.memory_space<vmem>>, vector<8x8xf32>
    %c0_9 = arith.constant 0 : index
    %c0_10 = arith.constant 0 : index
    %12 = vector.load %arg4[%c0_9, %c0_10] : memref<1x8xf32, #tpu.memory_space<vmem>>, vector<1x8xf32>
    %13 = vector.broadcast %12 : vector<1x8xf32> to vector<8x8xf32>
    %14 = arith.mulf %11, %13 : vector<8x8xf32>
    %c0_11 = arith.constant 0 : index
    %c0_12 = arith.constant 0 : index
    %15 = vector.load %arg5[%c0_11, %c0_12] : memref<1x8xf32, #tpu.memory_space<vmem>>, vector<1x8xf32>
    %16 = vector.broadcast %15 : vector<1x8xf32> to vector<8x8xf32>
    %17 = arith.addf %14, %16 : vector<8x8xf32>
    %cst_13 = arith.constant 0.000000e+00 : f32
    %18 = vector.broadcast %cst_13 : f32 to vector<8x8xf32>
    %19 = arith.maximumf %17, %18 : vector<8x8xf32>
    %c0_14 = arith.constant 0 : index
    %c0_15 = arith.constant 0 : index
    %20 = vector.load %arg8[%c0_14, %c0_15] : memref<4x8xf32, #tpu.memory_space<vmem>>, vector<4x8xf32>
    %cst_16 = arith.constant dense<0.000000e+00> : vector<16x8xf32>
    %21 = tpu.matmul %0, %20, %cst_16 {dimension_numbers = #tpu.dot_dimension_numbers<[1], [0], [0], [1], [0, 0, 1, 1], [], []>} : vector<16x4xf32>, vector<4x8xf32>, vector<16x8xf32> -> vector<16x8xf32>
    %c0_17 = arith.constant 0 : index
    %c0_18 = arith.constant 0 : index
    %22 = vector.load %arg12[%c0_17, %c0_18] : memref<16x8xf32, #tpu.memory_space<vmem>>, vector<16x8xf32>
    tpu.vector_store %arg12[%c0_17, %c0_18], %21 {strides = array<i32>} : memref<16x8xf32, #tpu.memory_space<vmem>>, vector<16x8xf32>,
    %c0_19 = arith.constant 0 : index
    %c0_20 = arith.constant 0 : index
    %23 = tpu.strided_load %arg12[%c0_19, %c0_20] {strides = array<i32: 2, 1>} : memref<16x8xf32, #tpu.memory_space<vmem>>, vector<8x8xf32>
    %c0_21 = arith.constant 0 : index
    %c0_22 = arith.constant 0 : index
    %24 = vector.load %arg9[%c0_21, %c0_22] : memref<1x8xf32, #tpu.memory_space<vmem>>, vector<1x8xf32>
    %25 = vector.broadcast %24 : vector<1x8xf32> to vector<8x8xf32>
    %26 = arith.mulf %23, %25 : vector<8x8xf32>
    %c0_23 = arith.constant 0 : index
    %c0_24 = arith.constant 0 : index
    %27 = vector.load %arg10[%c0_23, %c0_24] : memref<1x8xf32, #tpu.memory_space<vmem>>, vector<1x8xf32>
    %28 = vector.broadcast %27 : vector<1x8xf32> to vector<8x8xf32>
    %29 = arith.addf %26, %28 : vector<8x8xf32>
    %cst_25 = arith.constant 0.000000e+00 : f32
    %30 = vector.broadcast %cst_25 : f32 to vector<2x8xf32>
    %31 = vector.extract_strided_slice %19 {offsets = [0, 0], sizes = [6, 8], strides = [1, 1]} : vector<8x8xf32> to vector<6x8xf32>
    %32 = tpu.concatenate %30, %31 in 0 : vector<2x8xf32>, vector<6x8xf32> -> vector<8x8xf32>
    %cst_26 = arith.constant 0.000000e+00 : f32
    %33 = vector.broadcast %cst_26 : f32 to vector<2x8xf32>
    %34 = vector.extract_strided_slice %19 {offsets = [2, 0], sizes = [6, 8], strides = [1, 1]} : vector<8x8xf32> to vector<6x8xf32>
    %35 = tpu.concatenate %34, %33 in 0 : vector<6x8xf32>, vector<2x8xf32> -> vector<8x8xf32>
    %36 = tpu.concatenate %32, %19, %35 in 1 : vector<8x8xf32>, vector<8x8xf32>, vector<8x8xf32> -> vector<8x24xf32>
    %c0_27 = arith.constant 0 : index
    %c0_28 = arith.constant 0 : index
    %37 = vector.load %arg3[%c0_27, %c0_28] : memref<24x8xf32, #tpu.memory_space<vmem>>, vector<24x8xf32>
    %cst_29 = arith.constant dense<0.000000e+00> : vector<8x8xf32>
    %38 = tpu.matmul %36, %37, %cst_29 {dimension_numbers = #tpu.dot_dimension_numbers<[1], [0], [0], [1], [0, 0, 1, 1], [], []>} : vector<8x24xf32>, vector<24x8xf32>, vector<8x8xf32> -> vector<8x8xf32>
    %c0_30 = arith.constant 0 : index
    %c0_31 = arith.constant 0 : index
    %39 = vector.load %arg6[%c0_30, %c0_31] : memref<1x8xf32, #tpu.memory_space<vmem>>, vector<1x8xf32>
    %40 = vector.broadcast %39 : vector<1x8xf32> to vector<8x8xf32>
    %41 = arith.mulf %38, %40 : vector<8x8xf32>
    %c0_32 = arith.constant 0 : index
    %c0_33 = arith.constant 0 : index
    %42 = vector.load %arg7[%c0_32, %c0_33] : memref<1x8xf32, #tpu.memory_space<vmem>>, vector<1x8xf32>
    %43 = vector.broadcast %42 : vector<1x8xf32> to vector<8x8xf32>
    %44 = arith.addf %41, %43 : vector<8x8xf32>
    %45 = arith.addf %44, %29 : vector<8x8xf32>
    %cst_34 = arith.constant 0.000000e+00 : f32
    %46 = vector.broadcast %cst_34 : f32 to vector<8x8xf32>
    %47 = arith.maximumf %45, %46 : vector<8x8xf32>
    %c0_35 = arith.constant 0 : index
    %c0_36 = arith.constant 0 : index
    %48 = vector.load %arg11[%c0_35, %c0_36] : memref<8x8xf32, #tpu.memory_space<vmem>>, vector<8x8xf32>
    tpu.vector_store %arg11[%c0_35, %c0_36], %47 {strides = array<i32>} : memref<8x8xf32, #tpu.memory_space<vmem>>, vector<8x8xf32>,
    return
  }
  func.func @transform_0(%arg0: i32) -> (i32, i32) {
    %c0_i32 = arith.constant 0 : i32
    %c0_i32_0 = arith.constant 0 : i32
    return %arg0, %c0_i32 : i32, i32
  }
  func.func @transform_1(%arg0: i32) -> (i32, i32) {
    %c0_i32 = arith.constant 0 : i32
    %c0_i32_0 = arith.constant 0 : i32
    %c0_i32_1 = arith.constant 0 : i32
    return %c0_i32, %c0_i32_0 : i32, i32
  }
  func.func @transform_2(%arg0: i32) -> (i32, i32) {
    %c0_i32 = arith.constant 0 : i32
    %c0_i32_0 = arith.constant 0 : i32
    %c0_i32_1 = arith.constant 0 : i32
    return %c0_i32, %c0_i32_0 : i32, i32
  }
  func.func @transform_3(%arg0: i32) -> (i32, i32) {
    %c0_i32 = arith.constant 0 : i32
    %c0_i32_0 = arith.constant 0 : i32
    %c0_i32_1 = arith.constant 0 : i32
    return %c0_i32, %c0_i32_0 : i32, i32
  }
  func.func @transform_4(%arg0: i32) -> (i32, i32) {
    %c0_i32 = arith.constant 0 : i32
    %c0_i32_0 = arith.constant 0 : i32
    %c0_i32_1 = arith.constant 0 : i32
    return %c0_i32, %c0_i32_0 : i32, i32
  }
  func.func @transform_5(%arg0: i32) -> (i32, i32) {
    %c0_i32 = arith.constant 0 : i32
    %c0_i32_0 = arith.constant 0 : i32
    %c0_i32_1 = arith.constant 0 : i32
    return %c0_i32, %c0_i32_0 : i32, i32
  }
  func.func @transform_6(%arg0: i32) -> (i32, i32) {
    %c0_i32 = arith.constant 0 : i32
    %c0_i32_0 = arith.constant 0 : i32
    %c0_i32_1 = arith.constant 0 : i32
    return %c0_i32, %c0_i32_0 : i32, i32
  }
  func.func @transform_7(%arg0: i32) -> (i32, i32) {
    %c0_i32 = arith.constant 0 : i32
    %c0_i32_0 = arith.constant 0 : i32
    %c0_i32_1 = arith.constant 0 : i32
    return %c0_i32, %c0_i32_0 : i32, i32
  }
  func.func @transform_8(%arg0: i32) -> (i32, i32) {
    %c0_i32 = arith.constant 0 : i32
    %c0_i32_0 = arith.constant 0 : i32
    %c0_i32_1 = arith.constant 0 : i32
    return %c0_i32, %c0_i32_0 : i32, i32
  }
  func.func @transform_9(%arg0: i32) -> (i32, i32) {
    %c0_i32 = arith.constant 0 : i32
    %c0_i32_0 = arith.constant 0 : i32
    %c0_i32_1 = arith.constant 0 : i32
    return %c0_i32, %c0_i32_0 : i32, i32
  }
  func.func @transform_10(%arg0: i32) -> (i32, i32) {
    %c0_i32 = arith.constant 0 : i32
    %c0_i32_0 = arith.constant 0 : i32
    return %arg0, %c0_i32 : i32, i32
  }
}

</mosaic_0001>

<bundles_post_ra>
// kernel: tpu_custom_call.1
= control target key start
LH: loop header
LB: loop body
LE: loop exit
PB: predicated region body
PF: predicated region fallthrough
CT: control target
= control target key end

     0   :  { %s910_s13 = smov 0   ;;  %s987_s0 = inlined_call_operand.vmem [shape: f32[32,4], index: 0, kind: input, shape index: {}]   ;;  %s988_s1 = inlined_call_operand.vmem [shape: f32[12,8], index: 1, kind: input, shape index: {}]   ;;  %s989_s2 = inlined_call_operand.vmem [shape: f32[24,8], index: 2, kind: input, shape index: {}]   ;;  %s990_s3 = inlined_call_operand.vmem [shape: f32[1,8], index: 3, kind: input, shape index: {}]   ;;  %s991_s4 = inlined_call_operand.vmem [shape: f32[1,8], index: 4, kind: input, shape index: {}]   ;;  %s992_s5 = inlined_call_operand.vmem [shape: f32[1,8], index: 5, kind: input, shape index: {}]   ;;  %s993_s6 = inlined_call_operand.vmem [shape: f32[1,8], index: 6, kind: input, shape index: {}]   ;;  %s994_s7 = inlined_call_operand.vmem [shape: f32[4,8], index: 7, kind: input, shape index: {}]   ;;  %s995_s8 = inlined_call_operand.vmem [shape: f32[1,8], index: 8, kind: input, shape index: {}]   ;;  %s996_s9 = inlined_call_operand.vmem [shape: f32[1,8], index: 9, kind: input, shape index: {}]   ;;  %s997_s10 = inlined_call_operand.vmem [shape: f32[16,8], index: 10, kind: output, shape index: {}]  }
   0x1 LB: > { %s916_s14 = sadd.s32 4294967295, %s848_s13   ;;  %p778_p0 = scmp.ge.s32.totalorder %s848_s13, 1  ;;  %s848_s13 = sphi %s910_s13, %s20_s13  }
   0x2   : > { %p313_p1 = scmp.lt.s32.totalorder %s848_s13, 3 }
   0x4   : > { %p314_p2 = pnand %p778_p0, %p313_p1 }
   0x5   : > { %s779_s15 = sshll.u32 (!%p314_p2), %s916_s14, 1  ;;  %s850_s24 = smov (!%p314_p2), 4  }
   0x6   : > { %317 = sbr.rel (%p314_p2) target bundleno = 668 (0x29c), region = 60  ;;  %p351_p3 = scmp.lt.s32.totalorder (!%p314_p2), %s779_s15, 3 }
   0x7   : > { %s851_s25 = smov (!%p314_p2), 8   ;;  %p356_p4 = scmp.lt.s32.totalorder (!%p314_p2), %s916_s14, 1 }
   0xb   : > { %vm405_vm0 = vcmask 1043456   ;;  %v397_v0 = vld [vmem:[%s988_s1 + $0x8] sm:$0xf]  ;;  %v396_v1 = vld [vmem:[%s988_s1] sm:$0xff]  ;;  %s999_s15 = smov (!%p351_p3, %s779_s15), 3  ;;  %vm371_vm1 = vcmask 1046528  }
   0xc   : > { %808 = vmatprep.subr.msk.mxu0 %vm405_vm0, %v397_v0  ;;  %s780_s20 = sshll.u32 %s999_s15, 3  ;;  %vm390_vm2 = vcmask 31744   ;;  %vm364_vm3 = vcmask 1040384   ;;  %vm393_vm4 = vcmask 64512   ;;  %vm398_vm5 = vcmask 97280   ;;  %v627_v21 = vld [vmem:[%s989_s2 + $0x10] sm:$0xff] }
   0xd   : > { %809 = vmatpush3.msk.msra.mxu0 %vm405_vm0, %v397_v0  ;;  %s354_s23 = scalar_lea.vmem %s987_s0, %s780_s20  ;;  %v504_v20 = vld [vmem:[%s994_s7] sm:$0xf]  ;;  %v852_v22 = vmov 0.0   ;;  %v626_v25 = vld [vmem:[%s989_s2 + $0x8] sm:$0xff]  ;;  %vm853_vm6 = vmmov 0   ;;  %vm613_vm7 = vcmask 1045504  }
   0xe   : > { %810 = vmatprep.subr.mxu0 %v396_v1  ;;  %v360_v2 = vld [vmem:[%s354_s23] sm:$0xff]  ;;  %v361_v3 = vld [vmem:[%s354_s23 + $0x8] sm:$0xff]  ;;  %815 = vmatprep.subr.msk.mxu1 %vm405_vm0, %v504_v20  ;;  %s854_s20 = smov 16   ;;  %vm609_vm8 = vcmask 1041408   ;;  %vm623_vm9 = vcmask 130048   ;;  %vm628_vm10 = vcmask 195584  }
   0xf   : > { %811 = vmatpush3.msra.mxu0 %v396_v1  ;;  %377 = vrot.lane.b32.xlu0 %v360_v2, %s850_s24  ;;  %v372_v4 = vrot.slane %v360_v2, 1  ;;  %v373_v5 = vrot.slane %v361_v3, 1  ;;  %v365_v8 = vrot.slane %v360_v2, 7  ;;  %v366_v10 = vrot.slane %v361_v3, 7  ;;  %v625_v26 = vld [vmem:[%s989_s2] sm:$0xff]  ;;  %s1001_s14 = smov (!%p356_p4, %s916_s14), 1 }
  0x10   : > { %817 = vmatprep.mubr.msk.f32.mxu1 %vm390_vm2, %v360_v2  ;;  %816 = vmatpush3.msk.msra.mxu1 %vm405_vm0, %v504_v20  ;;  %v785_v27 = vld [vmem:[%s990_s3] ss:$0 sm:$0xff]  ;;  %s781_s29 = sshll.u32 %s1001_s14, 3 }
  0x11   : > { %v374_v6 = vsel %vm371_vm1, %v372_v4, %v373_v5  ;;  %v376_v7 = vsel %vm371_vm1, %v373_v5, 0.0  ;;  %v370_v9 = vsel %vm364_vm3, 0.0, %v365_v8  ;;  %v367_v13 = vsel %vm364_vm3, %v365_v8, %v366_v10  ;;  %818 = vmatmul.mubr.msk.f32.vlgmr.msra.gmra.mxu1 %vm390_vm2, %v361_v3  ;;  %820 = vmatprep.subr.mxu1 %v852_v22  ;;  %v786_v29 = vld [vmem:[%s991_s4] ss:$0 sm:$0xff]  ;;  %s359_s12 = scalar_lea.vmem %s997_s10, %s781_s29 }
  0x12   : > { %384 = vrot.lane.b32.xlu1 %v374_v6, %s851_s25  ;;  %821 = vmatpush3.msra.mxu1 %v627_v21  ;;  %v790_v44 = vld [vmem:[%s995_s8] ss:$0 sm:$0xff] }
  0x13   : > { %379 = vrot.lane.b32.xlu0 %v361_v3, %s850_s24  ;;  %822 = vmatprep.subr.mxu1 %v852_v22  ;;  %v793_v45 = vld [vmem:[%s992_s5] ss:$0 sm:$0xff] }
  0x14   : > { %823 = vmatpush3.msra.mxu1 %v626_v25  ;;  %826 = vmatprep.mubr.msk.f32.mxu1 %vm853_vm6, %v852_v22  ;;  %v791_v47 = vld [vmem:[%s996_s9] ss:$0 sm:$0xff] }
  0x15   : > { %824 = vmatprep.subr.mxu1 %v852_v22  ;;  %v794_v49 = vld [vmem:[%s993_s6] ss:$0 sm:$0xff] }
  0x16   : > { %386 = vrot.lane.b32.xlu1 %v376_v7, %s851_s25  ;;  %825 = vmatpush3.msra.mxu1 %v625_v26 }
  0x81   : > { %v378_v11 = vpop.permute.xlu0 %377 }
  0x82   : > { %v391_v12 = vsel %vm390_vm2, %v370_v9, %v378_v11 }
  0x84   : > { %v385_v14 = vpop.permute.xlu1 %384 }
  0x85   : > { %v394_v15 = vsel %vm393_vm4, %v391_v12, %v385_v14  ;;  %v380_v16 = vpop.permute.xlu0 %379 }
  0x86   : > { %812 = vmatprep.mubr.msk.f32.mxu0 %vm398_vm5, %v394_v15  ;;  %v392_v17 = vsel %vm390_vm2, %v367_v13, %v380_v16 }
  0x88   : > { %v387_v18 = vpop.permute.xlu1 %386 }
  0x89   : > { %v395_v19 = vsel %vm393_vm4, %v392_v17, %v387_v18 }
  0x8a   : > { %813 = vmatmul.mubr.msk.f32.vlgmr.msra.gmra.mxu0 %vm398_vm5, %v395_v19 }
  0xd1   : > { %v819_v35 = vpop.f32.mrf.mxu1 }
  0xd3   : > { %v578_v36 = vpop.f32.mrf.mxu1 }
 0x14a   : > { %v814_v23 = vpop.f32.mrf.mxu0 }
 0x14b   : > { %485 = vst.msk [vmem:[#allocation2 + $0x8] sm:$0xff] %vm393_vm4, %v814_v23 }
 0x14c   : > { %v475_v24 = vpop.f32.mrf.mxu0 }
 0x14d   : > { %484 = vst.msk [vmem:[#allocation2] sm:$0xff] %vm393_vm4, %v475_v24 }
 0x154   : > { %v486_v28 = vld [vmem:[#allocation2] ss:$2 sm:$0xff] }
 0x155   : > { %v494_v30 = vmul.f32 %v785_v27, %v486_v28  ;;  %588 = vst.msk [vmem:[#allocation2 + $0x8] sm:$0xff] %vm393_vm4, %v819_v35  ;;  %587 = vst.msk [vmem:[#allocation2] sm:$0xff] %vm393_vm4, %v578_v36 }
 0x157   : > { %v502_v31 = vadd.f32 %v786_v29, %v494_v30 }
 0x159   : > { %v503_v32 = vmax.f32 %v502_v31, 0.0 }
 0x15b   : > { %615 = vrot.lane.b32.xlu0 %v503_v32, %s851_s25  ;;  %v611_v33 = vrot.slane %v503_v32, 2  ;;  %v607_v37 = vrot.slane %v503_v32, 6 }
 0x15c   : > { %v589_v43 = vld [vmem:[#allocation2] ss:$2 sm:$0xff] }
 0x15d   : > { %v614_v34 = vsel %vm613_vm7, %v611_v33, 0.0  ;;  %v610_v39 = vsel %vm609_vm8, 0.0, %v607_v37  ;;  %v597_v46 = vmul.f32 %v790_v44, %v589_v43 }
 0x15e   : > { %619 = vrot.lane.b32.xlu1 %v614_v34, %s854_s20 }
 0x15f   : > { %v605_v52 = vadd.f32 %v791_v47, %v597_v46 }
 0x1cd   : > { %v616_v38 = vpop.permute.xlu0 %615 }
 0x1ce   : > { %v622_v40 = vsel %vm393_vm4, %v610_v39, %v616_v38 }
 0x1d0   : > { %v620_v41 = vpop.permute.xlu1 %619 }
 0x1d1   : > { %v624_v42 = vsel %vm623_vm9, %v622_v40, %v620_v41 }
 0x1d2   : > { %827 = vmatmul.mubr.msk.f32.vlgmr.msra.gmra.mxu1 %vm628_vm10, %v624_v42 }
 0x292   : > { %v698_v48 = vpop.f32.mrf.mxu1 }
 0x293   : > { %v709_v50 = vmul.f32 %v793_v45, %v698_v48 }
 0x294   : > { %v828_v51 = vpop.f32.mrf.mxu1 }
 0x295   : > { %v717_v53 = vadd.f32 %v794_v49, %v709_v50 }
 0x297   : > { %v718_v54 = vadd.f32 %v717_v53, %v605_v52 }
 0x299   : > { %v719_v55 = vmax.f32 %v718_v54, 0.0 }
 0x29b   : > { %720 = vst.msk [vmem:[%s359_s12] sm:$0xff] %vm393_vm4, %v719_v55 }
 0x29c PF: > { %s20_s13 = sadd.s32 1, %s848_s13  }
 0x29d   : > { %p17_p5 = scmp.ge.s32.totalorder %s20_s13, 4  }
 0x29f   :  { %19 = sbr.rel (!%p17_p5) target bundleno = 1 (0x1), region = 90 }

</bundles_post_ra>
